<compile_context>
chip_gen: v7x
topology: tpu7x:2x2x1
jax: 0.10.0
libtpu: 0.0.40
codegen_flags: <defaults>
</compile_context>

<pallas_src>
import numpy as np
import jax
import jax.numpy as jnp
from jax.experimental import pallas as pl
from jax.experimental.pallas import tpu as pltpu

C_IN = 64
C_OUT = 17
KSIZE = 2
STRIDE = 3
PADDING = 5


def _convt_relu_kernel(w_ref, s_ref, x_ref, o_ref):
    """One batch-block step.

    w_ref: (K, C_out, C_in)    resident weights (tap-major, PyTorch layout transposed)
    s_ref: (K, L, L_out)       resident 0/1 scatter ("spread") matrices
    x_ref: (NB, C_in, L)       input batch block, L on lanes
    o_ref: (NB, C_out, L_out)  final (cropped + interleaved) output block
    """
    nb = x_ref.shape[0]
    ksize = w_ref.shape[0]
    c_out = o_ref.shape[1]
    l_out = o_ref.shape[2]
    for b in range(nb):
        xb = x_ref[b]  # (C_in, L)
        acc = jnp.zeros((c_out, l_out), jnp.float32)
        for k in range(ksize):
            # Tap-k contribution for every input position: (C_out, L).
            y = jnp.dot(w_ref[k], xb, preferred_element_type=jnp.float32)
            # Scatter input lane l -> output lane stride*l + k - padding (crop
            # fused), as a matmul against a 0/1 matrix on the idle MXU. Each
            # output element receives at most one y value, so this is exact.
            acc = acc + jnp.dot(y, s_ref[k], preferred_element_type=jnp.float32)
        o_ref[b] = jnp.maximum(acc, 0.0).astype(o_ref.dtype)


def conv_transpose1d_relu(x, weight, *, stride=STRIDE, padding=PADDING):
    """x: (N, C_in, L) f32, weight: (C_in, C_out, K) f32 -> (N, C_out, L_out) f32."""
    N, C_in, L = x.shape
    C_in_w, C_out, K = weight.shape
    assert C_in == C_in_w, (C_in, C_in_w)
    L_out = (L - 1) * stride - 2 * padding + K
    assert L_out > 0, f"output length {L_out} <= 0 for L={L}, padding={padding}"

    # The resident spread matrices grow ~ stride*L^2; fine for the module shape
    # (L=100 -> ~230 KB) but guard against pathological inputs.
    # TODO(synk): add an L-tiled path (halo-aware output blocks) for very large L.
    assert K * L * L_out * 4 <= (8 << 20), "L too large for the fused single-tile path"

    # (C_in, C_out, K) -> (K, C_out, C_in): tiny one-time reshuffle.
    wT = jnp.transpose(weight, (2, 1, 0))

    # 0/1 spread matrices: S[k, l, j] = 1 iff stride*l + k - padding == j,
    # i.e. the exact transposed-conv scatter with the output crop baked in.
    # Built with numpy (static shapes) so it becomes a compile-time constant.
    S = np.zeros((K, L, L_out), np.float32)
    l_idx = np.arange(L)
    for k in range(K):
        pos = l_idx * stride + k - padding
        valid = (pos >= 0) & (pos < L_out)
        S[k, l_idx[valid], pos[valid]] = 1.0
    S = jnp.asarray(S)

    # Batch blocking: 2 parallel grid steps when possible (keeps both v7x
    # TensorCores busy via dimension_semantics=("parallel",)); a single step
    # otherwise. Per-step VMEM is tiny (<1 MiB) on every generation.
    NBLK = 2 if (N >= 2 and N % 2 == 0) else 1
    NB = N // NBLK

    flops = 2 * N * K * C_out * C_in * L + 2 * N * K * C_out * L * L_out
    bytes_accessed = 4 * (N * C_in * L + wT.size + S.size + N * C_out * L_out)

    return pl.pallas_call(
        _convt_relu_kernel,
        out_shape=jax.ShapeDtypeStruct((N, C_out, L_out), jnp.float32),
        grid=(NBLK,),
        in_specs=[
            # Small resident blocks (constant index_map).
            pl.BlockSpec((K, C_out, C_in), lambda i: (0, 0, 0)),
            pl.BlockSpec((K, L, L_out), lambda i: (0, 0, 0)),
            # Input: NB batch rows per step, full L on lanes.
            pl.BlockSpec((NB, C_in, L), lambda i: (i, 0, 0)),
        ],
        # Output block is the final layout: no post-kernel transpose/reshape/crop.
        out_specs=pl.BlockSpec((NB, C_out, L_out), lambda i: (i, 0, 0)),
        compiler_params=pltpu.CompilerParams(
            dimension_semantics=("parallel",),
        ),
        cost_estimate=pl.CostEstimate(
            flops=flops, transcendentals=0, bytes_accessed=bytes_accessed
        ),
    )(wT, S, x)


def _reference_numpy(x, w, stride, padding):
    x = np.asarray(x, np.float32)
    w = np.asarray(w, np.float32)
    N, C_in, L = x.shape
    _, C_out, K = w.shape
    L_full = (L - 1) * stride + K
    out = np.zeros((N, C_out, L_full), np.float32)
    for n in range(N):
        for i in range(L):
            for k in range(K):
                out[n, :, i * stride + k] += x[n, :, i] @ w[:, :, k]
    out = out[:, :, padding:L_full - padding]
    return np.maximum(out, 0.0)


if __name__ == "__main__":
    key = jax.random.PRNGKey(0)
    kx_small, kx_full, kw = jax.random.split(key, 3)

    # Deterministic weight, PyTorch ConvTranspose1d layout (C_in, C_out, K).
    bound = 1.0 / np.sqrt(C_IN * KSIZE)
    weight = jax.random.uniform(
        kw, (C_IN, C_OUT, KSIZE), dtype=jnp.float32, minval=-bound, maxval=bound
    )

    fn = jax.jit(conv_transpose1d_relu)

    # Small shape consistent with the module (C_in fixed at 64 by the layer).
    x_small = jax.random.normal(kx_small, (2, C_IN, 16), dtype=jnp.float32)
    out_small = jax.block_until_ready(fn(x_small, weight))
    ref_small = _reference_numpy(np.asarray(x_small), np.asarray(weight), STRIDE, PADDING)
    assert out_small.shape == ref_small.shape, (out_small.shape, ref_small.shape)
    np.testing.assert_allclose(np.asarray(out_small), ref_small, rtol=1e-5, atol=1e-5)

    # The module's own shape (10, 64, 100).
    x_full = jax.random.normal(kx_full, (10, C_IN, 100), dtype=jnp.float32)
    out_full = jax.block_until_ready(fn(x_full, weight))
    ref_full = _reference_numpy(np.asarray(x_full), np.asarray(weight), STRIDE, PADDING)
    assert out_full.shape == ref_full.shape, (out_full.shape, ref_full.shape)
    np.testing.assert_allclose(np.asarray(out_full), ref_full, rtol=1e-5, atol=1e-5)

    print("KERNEL_OK")
</pallas_src>

<mosaic_0001>
module attributes {stable_mosaic.version = 11 : i64} {
  func.func @_convt_relu_kernel(%arg0: i32, %arg1: memref<2x17x64xf32, #tpu.memory_space<vmem>>, %arg2: memref<2x16x37xf32, #tpu.memory_space<vmem>>, %arg3: memref<1x64x16xf32, #tpu.memory_space<vmem>>, %arg4: memref<1x17x37xf32, #tpu.memory_space<vmem>>) attributes {dimension_semantics = [#tpu.dimension_semantics<parallel>], iteration_bounds = array<i64: 2>, scalar_prefetch = 0 : i64, scratch_operands = 0 : i64, tpu.core_type = #tpu.core_type<tc>, window_params = [{pipeline_mode = #tpu.pipeline_mode<synchronous>, transform_indices = @transform_0, window_bounds = array<i64: 2, 17, 64>}, {pipeline_mode = #tpu.pipeline_mode<synchronous>, transform_indices = @transform_1, window_bounds = array<i64: 2, 16, 37>}, {transform_indices = @transform_2, window_bounds = array<i64: 1, 64, 16>}, {transform_indices = @transform_3, window_bounds = array<i64: 1, 17, 37>}]} {
    %c0 = arith.constant 0 : index
    %c0_0 = arith.constant 0 : index
    %c0_1 = arith.constant 0 : index
    %0 = vector.load %arg3[%c0, %c0_0, %c0_1] : memref<1x64x16xf32, #tpu.memory_space<vmem>>, vector<1x64x16xf32>
    %1 = vector.shape_cast %0 : vector<1x64x16xf32> to vector<64x16xf32>
    %cst = arith.constant 0.000000e+00 : f32
    %2 = vector.broadcast %cst : f32 to vector<17x37xf32>
    %c0_2 = arith.constant 0 : index
    %c0_3 = arith.constant 0 : index
    %c0_4 = arith.constant 0 : index
    %3 = vector.load %arg1[%c0_2, %c0_3, %c0_4] : memref<2x17x64xf32, #tpu.memory_space<vmem>>, vector<1x17x64xf32>
    %4 = vector.shape_cast %3 : vector<1x17x64xf32> to vector<17x64xf32>
    %cst_5 = arith.constant dense<0.000000e+00> : vector<17x16xf32>
    %5 = tpu.matmul %4, %1, %cst_5 {dimension_numbers = #tpu.dot_dimension_numbers<[1], [0], [0], [1], [0, 0, 1, 1], [], []>} : vector<17x64xf32>, vector<64x16xf32>, vector<17x16xf32> -> vector<17x16xf32>
    %c0_6 = arith.constant 0 : index
    %c0_7 = arith.constant 0 : index
    %c0_8 = arith.constant 0 : index
    %6 = vector.load %arg2[%c0_6, %c0_7, %c0_8] : memref<2x16x37xf32, #tpu.memory_space<vmem>>, vector<1x16x37xf32>
    %7 = vector.shape_cast %6 : vector<1x16x37xf32> to vector<16x37xf32>
    %cst_9 = arith.constant dense<0.000000e+00> : vector<17x37xf32>
    %8 = tpu.matmul %5, %7, %cst_9 {dimension_numbers = #tpu.dot_dimension_numbers<[1], [0], [0], [1], [0, 0, 1, 1], [], []>} : vector<17x16xf32>, vector<16x37xf32>, vector<17x37xf32> -> vector<17x37xf32>
    %9 = arith.addf %2, %8 : vector<17x37xf32>
    %c1 = arith.constant 1 : index
    %c0_10 = arith.constant 0 : index
    %c0_11 = arith.constant 0 : index
    %10 = vector.load %arg1[%c1, %c0_10, %c0_11] : memref<2x17x64xf32, #tpu.memory_space<vmem>>, vector<1x17x64xf32>
    %11 = vector.shape_cast %10 : vector<1x17x64xf32> to vector<17x64xf32>
    %cst_12 = arith.constant dense<0.000000e+00> : vector<17x16xf32>
    %12 = tpu.matmul %11, %1, %cst_12 {dimension_numbers = #tpu.dot_dimension_numbers<[1], [0], [0], [1], [0, 0, 1, 1], [], []>} : vector<17x64xf32>, vector<64x16xf32>, vector<17x16xf32> -> vector<17x16xf32>
    %c1_13 = arith.constant 1 : index
    %c0_14 = arith.constant 0 : index
    %c0_15 = arith.constant 0 : index
    %13 = vector.load %arg2[%c1_13, %c0_14, %c0_15] : memref<2x16x37xf32, #tpu.memory_space<vmem>>, vector<1x16x37xf32>
    %14 = vector.shape_cast %13 : vector<1x16x37xf32> to vector<16x37xf32>
    %cst_16 = arith.constant dense<0.000000e+00> : vector<17x37xf32>
    %15 = tpu.matmul %12, %14, %cst_16 {dimension_numbers = #tpu.dot_dimension_numbers<[1], [0], [0], [1], [0, 0, 1, 1], [], []>} : vector<17x16xf32>, vector<16x37xf32>, vector<17x37xf32> -> vector<17x37xf32>
    %16 = arith.addf %9, %15 : vector<17x37xf32>
    %cst_17 = arith.constant 0.000000e+00 : f32
    %17 = vector.broadcast %cst_17 : f32 to vector<17x37xf32>
    %18 = arith.maximumf %16, %17 : vector<17x37xf32>
    %c0_18 = arith.constant 0 : index
    %c0_19 = arith.constant 0 : index
    %c0_20 = arith.constant 0 : index
    %19 = vector.load %arg4[%c0_18, %c0_19, %c0_20] : memref<1x17x37xf32, #tpu.memory_space<vmem>>, vector<1x17x37xf32>
    %20 = vector.shape_cast %19 : vector<1x17x37xf32> to vector<17x37xf32>
    %21 = vector.shape_cast %18 : vector<17x37xf32> to vector<1x17x37xf32>
    tpu.vector_store %arg4[%c0_18, %c0_19, %c0_20], %21 {strides = array<i32>} : memref<1x17x37xf32, #tpu.memory_space<vmem>>, vector<1x17x37xf32>,
    return
  }
  func.func @transform_0(%arg0: i32) -> (i32, i32, i32) {
    %c0_i32 = arith.constant 0 : i32
    %c0_i32_0 = arith.constant 0 : i32
    %c0_i32_1 = arith.constant 0 : i32
    %c0_i32_2 = arith.constant 0 : i32
    return %c0_i32, %c0_i32_0, %c0_i32_1 : i32, i32, i32
  }
  func.func @transform_1(%arg0: i32) -> (i32, i32, i32) {
    %c0_i32 = arith.constant 0 : i32
    %c0_i32_0 = arith.constant 0 : i32
    %c0_i32_1 = arith.constant 0 : i32
    %c0_i32_2 = arith.constant 0 : i32
    return %c0_i32, %c0_i32_0, %c0_i32_1 : i32, i32, i32
  }
  func.func @transform_2(%arg0: i32) -> (i32, i32, i32) {
    %c0_i32 = arith.constant 0 : i32
    %c0_i32_0 = arith.constant 0 : i32
    %c0_i32_1 = arith.constant 0 : i32
    return %arg0, %c0_i32, %c0_i32_0 : i32, i32, i32
  }
  func.func @transform_3(%arg0: i32) -> (i32, i32, i32) {
    %c0_i32 = arith.constant 0 : i32
    %c0_i32_0 = arith.constant 0 : i32
    %c0_i32_1 = arith.constant 0 : i32
    return %arg0, %c0_i32, %c0_i32_0 : i32, i32, i32
  }
}

</mosaic_0001>

<bundles_post_ra>
// kernel: conv_transpose1d_relu.1
= control target key start
LH: loop header
LB: loop body
LE: loop exit
PB: predicated region body
PF: predicated region fallthrough
CT: control target
= control target key end

     0   :  { %s824_s12 = smov 0   ;;  %s911_s0 = inlined_call_operand.vmem [shape: f32[2,17,64], index: 0, kind: input, shape index: {}]   ;;  %s912_s1 = inlined_call_operand.vmem [shape: f32[2,16,37], index: 1, kind: input, shape index: {}]   ;;  %s913_s2 = inlined_call_operand.vmem [shape: f32[2,64,16], index: 2, kind: input, shape index: {}]   ;;  %s914_s3 = inlined_call_operand.vmem [shape: f32[2,17,37], index: 3, kind: output, shape index: {}]  }
   0x1 LB: > { %s612_s13 = sadd.s32 4294967295, %s799_s12   ;;  %p616_p0 = scmp.ge.s32.totalorder %s799_s12, 1  ;;  %s799_s12 = sphi %s824_s12, %s13_s12  }
   0x2   : > { %p137_p1 = scmp.lt.s32.totalorder %s799_s12, 3 }
   0x4   : > { %p138_p2 = pnand %p616_p0, %p137_p1 }
   0x5   : > { %p161_p3 = scmp.lt.s32.totalorder (!%p138_p2), %s612_s13, 1  ;;  %v801_v0 = vmov (!%p138_p2), 0.0|0.0   ;;  %vm802_vm0 = vmmov (!%p138_p2), 0   ;;  %v803_v1 = vmov (!%p138_p2), 0.0   ;;  %v629_v14 = vld [vmem:[%s912_s1 + $0x10] sm:$0xff] (!%p138_p2)  ;;  %v630_v15 = vld [vmem:[%s912_s1 + $0x18] sm:$0xff] (!%p138_p2) }
   0x6   : > { %141 = sbr.rel (%p138_p2) target bundleno = 471 (0x1d7), region = 32  ;;  %748 = vmatprep.subr.bf16.mxu0 (!%p138_p2), %v801_v0  ;;  %760 = vmatprep.subr.bf16.mxu1 (!%p138_p2), %v801_v0  ;;  %v272_v16 = vld [vmem:[%s912_s1] sm:$0xff] (!%p138_p2)  ;;  %v273_v17 = vld [vmem:[%s912_s1 + $0x8] sm:$0xff] (!%p138_p2)  ;;  %vm182_vm1 = vcmask (!%p138_p2), 523264   ;;  %v623_v19 = vld [vmem:[%s911_s0 + $0x18] sm:$0xff] (!%p138_p2)  ;;  %v773_v20 = vpack.c.bf16 (!%p138_p2), %v630_v15, %v629_v14  ;;  %vm370_vm2 = vcmask (!%p138_p2), 130048  }
   0x7   : > { %688 = vmatprep.mubr.msk.f32.mxu0 (!%p138_p2), %vm802_vm0, %v803_v1  ;;  %713 = vmatprep.mubr.msk.f32.mxu1 (!%p138_p2), %vm802_vm0, %v803_v1  ;;  %v179_v18 = vld [vmem:[%s911_s0] sm:$0xff] (!%p138_p2)  ;;  %v776_v21 = vpack.c.bf16 (!%p138_p2), %v273_v17, %v272_v16  ;;  %v180_v22 = vld [vmem:[%s911_s0 + $0x8] sm:$0xff] (!%p138_p2)  ;;  %v181_v24 = vld [vmem:[%s911_s0 + $0x10] sm:$0x1] (!%p138_p2)  ;;  %vm552_vm3 = vcmask (!%p138_p2), 302080   ;;  %vm555_vm4 = vcmask (!%p138_p2), 294912  }
   0x8   : > { %v624_v23 = vld [vmem:[%s911_s0 + $0x20] sm:$0xff] (!%p138_p2)  ;;  %v625_v25 = vld [vmem:[%s911_s0 + $0x28] sm:$0x1] (!%p138_p2) }
   0xd   : > { %s916_s13 = smov (!%p161_p3, %s612_s13), 1 }
   0xe   : > { %s639_s14 = sshll.u32 %s916_s13, 6  ;;  %s781_s11 = smul.u32 24, %s916_s13 }
   0xf   : > { %s165_s17 = scalar_lea.vmem %s913_s2, %s639_s14 }
  0x10   : > { %v171_v2 = vld [vmem:[%s165_s17] sm:$0xff]  ;;  %v172_v3 = vld [vmem:[%s165_s17 + $0x8] sm:$0xff]  ;;  %v173_v4 = vld [vmem:[%s165_s17 + $0x10] sm:$0xff]  ;;  %s170_s16 = scalar_lea.vmem %s914_s3, %s781_s11 }
  0x11   : > { %v749_v5 = vpack.c.bf16 %v172_v3, %v171_v2  ;;  %v174_v6 = vld [vmem:[%s165_s17 + $0x18] sm:$0xff]  ;;  %v175_v8 = vld [vmem:[%s165_s17 + $0x20] sm:$0xff]  ;;  %v176_v9 = vld [vmem:[%s165_s17 + $0x28] sm:$0xff] }
  0x12   : > { %v752_v7 = vpack.c.bf16 %v174_v6, %v173_v4  ;;  %v755_v10 = vpack.c.bf16 %v176_v9, %v175_v8  ;;  %v177_v11 = vld [vmem:[%s165_s17 + $0x30] sm:$0xff]  ;;  %v178_v12 = vld [vmem:[%s165_s17 + $0x38] sm:$0xff] }
  0x13   : > { %750 = vmatpush3.bf16.msra.mxu0 %v749_v5  ;;  %762 = vmatpush3.bf16.msra.mxu1 %v749_v5  ;;  %v758_v13 = vpack.c.bf16 %v178_v12, %v177_v11 }
  0x14   : > { %751 = vmatprep.subr.bf16.mxu0 %v801_v0  ;;  %763 = vmatprep.subr.bf16.mxu1 %v801_v0 }
  0x17   : > { %753 = vmatpush3.bf16.msra.mxu0 %v752_v7  ;;  %765 = vmatpush3.bf16.msra.mxu1 %v752_v7 }
  0x18   : > { %754 = vmatprep.subr.bf16.mxu0 %v801_v0  ;;  %766 = vmatprep.subr.bf16.mxu1 %v801_v0 }
  0x1b   : > { %756 = vmatpush3.bf16.msra.mxu0 %v755_v10  ;;  %768 = vmatpush3.bf16.msra.mxu1 %v755_v10 }
  0x1c   : > { %757 = vmatprep.subr.bf16.mxu0 %v801_v0  ;;  %769 = vmatprep.subr.bf16.mxu1 %v801_v0 }
  0x1f   : > { %759 = vmatpush3.bf16.msra.mxu0 %v758_v13  ;;  %771 = vmatpush3.bf16.msra.mxu1 %v758_v13 }
  0x20   : > { %772 = vmatprep.subr.bf16.mxu1 %v801_v0  ;;  %775 = vmatprep.subr.bf16.mxu0 %v801_v0 }
  0x22   : > { %689 = vmatmul.mubr.msk.f32.vlgmr.msra.gmra.mrb[0].mxu0 %vm182_vm1, %v179_v18  ;;  %714 = vmatmul.mubr.msk.f32.vlgmr.msra.gmra.mrb[0].mxu1 %vm182_vm1, %v623_v19 }
  0x23   : > { %691 = vmatprep.mubr.msk.f32.mxu0 %vm802_vm0, %v803_v1  ;;  %716 = vmatprep.mubr.msk.f32.mxu1 %vm802_vm0, %v803_v1 }
  0x24   : > { %774 = vmatpush3.bf16.msra.mxu1 %v773_v20  ;;  %777 = vmatpush3.bf16.msra.mxu0 %v776_v21 }
  0x26   : > { %692 = vmatmul.mubr.msk.f32.gmra.mrb[2].mxu0 %vm182_vm1, %v180_v22  ;;  %717 = vmatmul.mubr.msk.f32.gmra.mrb[2].mxu1 %vm182_vm1, %v624_v23 }
  0x27   : > { %694 = vmatprep.mubr.msk.f32.mxu0 %vm802_vm0, %v803_v1  ;;  %719 = vmatprep.mubr.msk.f32.mxu1 %vm802_vm0, %v803_v1 }
  0x2a   : > { %695 = vmatmul.mubr.msk.f32.gmra.mrb[4].mxu0 %vm182_vm1, %v181_v24  ;;  %720 = vmatmul.mubr.msk.f32.gmra.mrb[4].mxu1 %vm182_vm1, %v625_v25 }
  0x2b   : > { %726 = vmatprep.mubr.msk.f32.mxu1 %vm802_vm0, %v803_v1  ;;  %739 = vmatprep.mubr.msk.f32.mxu0 %vm802_vm0, %v803_v1 }
  0xf5   : > { %v258_v26 = vpop.f32.mrb[0].mxu0  ;;  %v353_v27 = vpop.f32.mrb[0].mxu1 }
  0xf6   : > { %v690_v28 = vpop.f32.mrb[1].mxu0  ;;  %v715_v29 = vpop.f32.mrb[1].mxu1  ;;  %727 = vmatmul.mubr.msk.f32.vlgmr.msra.gmra.mrb[6].mxu1 %vm370_vm2, %v353_v27  ;;  %740 = vmatmul.mubr.msk.f32.vlgmr.msra.gmra.mrb[6].mxu0 %vm370_vm2, %v258_v26 }
  0xf7   : > { %729 = vmatprep.mubr.msk.f32.mxu1 %vm802_vm0, %v803_v1  ;;  %742 = vmatprep.mubr.msk.f32.mxu0 %vm802_vm0, %v803_v1 }
  0xf9   : > { %v263_v30 = vpop.f32.mrb[2].mxu0  ;;  %v358_v31 = vpop.f32.mrb[2].mxu1 }
  0xfa   : > { %v693_v32 = vpop.f32.mrb[3].mxu0  ;;  %v718_v33 = vpop.f32.mrb[3].mxu1  ;;  %730 = vmatmul.mubr.msk.f32.gmra.mrb[8].mxu1 %vm370_vm2, %v358_v31  ;;  %743 = vmatmul.mubr.msk.f32.gmra.mrb[8].mxu0 %vm370_vm2, %v263_v30 }
  0xfb   : > { %732 = vmatprep.mubr.msk.f32.mxu1 %vm802_vm0, %v803_v1  ;;  %745 = vmatprep.mubr.msk.f32.mxu0 %vm802_vm0, %v803_v1 }
  0xfd   : > { %v268_v34 = vpop.f32.mrb[4].mxu0  ;;  %v363_v35 = vpop.f32.mrb[4].mxu1 }
  0xfe   : > { %v696_v36 = vpop.f32.mrb[5].mxu0  ;;  %v721_v37 = vpop.f32.mrb[5].mxu1  ;;  %733 = vmatmul.mubr.msk.f32.gmra.mrb[10].mxu1 %vm370_vm2, %v363_v35  ;;  %746 = vmatmul.mubr.msk.f32.gmra.mrb[10].mxu0 %vm370_vm2, %v268_v34 }
 0x1c9   : > { %v446_v38 = vpop.f32.mrb[6].mxu1  ;;  %v535_v39 = vpop.f32.mrb[6].mxu0 }
 0x1ca   : > { %v536_v40 = vadd.f32 %v535_v39, %v446_v38  ;;  %v728_v41 = vpop.f32.mrb[7].mxu1  ;;  %v741_v42 = vpop.f32.mrb[7].mxu0 }
 0x1cc   : > { %v549_v43 = vmax.f32 %v536_v40, 0.0 }
 0x1cd   : > { %v451_v44 = vpop.f32.mrb[8].mxu1  ;;  %v540_v45 = vpop.f32.mrb[8].mxu0 }
 0x1ce   : > { %553 = vst.msk [vmem:[%s170_s16] sm:$0xff] %vm552_vm3, %v549_v43  ;;  %v541_v46 = vadd.f32 %v540_v45, %v451_v44  ;;  %v731_v47 = vpop.f32.mrb[9].mxu1  ;;  %v744_v48 = vpop.f32.mrb[9].mxu0 }
 0x1d0   : > { %v550_v49 = vmax.f32 %v541_v46, 0.0 }
 0x1d1   : > { %v456_v50 = vpop.f32.mrb[10].mxu1  ;;  %v545_v51 = vpop.f32.mrb[10].mxu0 }
 0x1d2   : > { %554 = vst.msk [vmem:[%s170_s16 + $0x8] sm:$0xff] %vm552_vm3, %v550_v49  ;;  %v546_v52 = vadd.f32 %v545_v51, %v456_v50  ;;  %v734_v53 = vpop.f32.mrb[11].mxu1  ;;  %v747_v54 = vpop.f32.mrb[11].mxu0 }
 0x1d4   : > { %v551_v55 = vmax.f32 %v546_v52, 0.0 }
 0x1d6   : > { %556 = vst.msk [vmem:[%s170_s16 + $0x10] sm:$0x1] %vm555_vm4, %v551_v55 }
 0x1d7 PF: > { %s13_s12 = sadd.s32 1, %s799_s12  }
 0x1d8   : > { %p10_p4 = scmp.ge.s32.totalorder %s13_s12, 4  }
 0x1da   :  { %12 = sbr.rel (!%p10_p4) target bundleno = 1 (0x1), region = 64 }

</bundles_post_ra>
